<compile_context>
chip_gen: v6e
topology: v6e:2x2x1
jax: 0.10.0
libtpu: 0.0.40
codegen_flags: <defaults>
</compile_context>

<pallas_src>
import math
import functools

import jax
import jax.numpy as jnp
from jax import lax
from jax.experimental import pallas as pl
from jax.experimental.pallas import tpu as pltpu


_SQRT_HALF = 0.7071067811865476


def _round_up(a, b):
    return ((a + b - 1) // b) * b


def _cdiv(a, b):
    return (a + b - 1) // b


def _largest_divisor_tile(requested, total, unit):
    """Largest multiple of `unit` that is <= requested and divides `total`.
    `total` is a multiple of `unit`, so `unit` itself always qualifies."""
    requested = max(unit, min(requested, total))
    t = (requested // unit) * unit
    while total % t:
        t -= unit
    return t


def _vmem_ceiling_bytes():
    """Generation-aware ceiling for the VMEM we ask the compiler for."""
    try:
        cap = pltpu.get_tpu_info().vmem_capacity_bytes
    except Exception:
        cap = 64 * 1024 * 1024                 # conservative fallback (v7x-sized)
    return int(cap * 3 // 4)                   # ~48 MiB on v7x, ~96 MiB on v5e/v6e


# --------------------------------------------------------------------------------------
# Kernels
# --------------------------------------------------------------------------------------

def _geglu_kernel_ktiled(x_ref, w_ref, b_ref, o_ref, acc_ref):
    """K-tiled path.
    x_ref:   (tile_m, tile_k)        activations (native dtype)
    w_ref:   (tile_k, 2*tile_n)      packed weights for this N tile: [value | gate]
    b_ref:   (1, 2*tile_n)           packed bias:                    [value | gate]
    o_ref:   (tile_m, tile_n)        output tile
    acc_ref: (tile_m, 2*tile_n) f32  accumulator, persists across the K grid axis
    """
    k = pl.program_id(2)

    @pl.when(k == 0)
    def _init():
        # Seed the accumulator with the bias: removes the zero-fill store and the
        # separate bias read-modify-write in the epilogue.
        acc_ref[...] = jnp.broadcast_to(b_ref[...].astype(jnp.float32), acc_ref.shape)

    # Single fused matmul for both halves; f32 accumulation on the MXU.
    acc_ref[...] += jnp.dot(x_ref[...], w_ref[...], preferred_element_type=jnp.float32)

    @pl.when(k == pl.num_programs(2) - 1)
    def _finalize():
        tile_n = o_ref.shape[1]
        h = acc_ref[...]
        v = h[:, :tile_n]                       # value half (lane-aligned slice)
        g = h[:, tile_n:]                       # gate half
        # exact erf-GELU, matching torch.nn.functional.gelu default
        gelu_g = 0.5 * g * (1.0 + lax.erf(g * jnp.float32(_SQRT_HALF)))
        o_ref[...] = (v * gelu_g).astype(o_ref.dtype)


def _geglu_kernel_resident(x_ref, w_ref, b_ref, o_ref):
    """W-resident path: the whole (padded) K dimension in one MXU call, no scratch.
    x_ref: (tile_m, dim_in_pad), w_ref: (dim_in_pad, 2*tile_n), b_ref: (1, 2*tile_n).
    """
    tile_n = o_ref.shape[1]
    h = jnp.dot(x_ref[...], w_ref[...], preferred_element_type=jnp.float32)
    h = h + b_ref[...].astype(jnp.float32)
    v = h[:, :tile_n]
    g = h[:, tile_n:]
    gelu_g = 0.5 * g * (1.0 + lax.erf(g * jnp.float32(_SQRT_HALF)))
    o_ref[...] = (v * gelu_g).astype(o_ref.dtype)


# --------------------------------------------------------------------------------------
# Parameter packing (module-init time, NOT the hot path)
# --------------------------------------------------------------------------------------

def prepare_geglu_params(weight, bias, *, tile_n=256):
    """Repack PyTorch-layout weight (2*dim_out, dim_in) and bias (2*dim_out,) into an
    MXU-friendly layout.  Call ONCE at module init.

    Returns (w_packed, b_packed, meta):
      w_packed: (dim_in_pad, n_tiles * 2*tile_n) with per-N-tile columns [value | gate]
      b_packed: (1,          n_tiles * 2*tile_n)
      meta:     dict(dim_in=..., dim_out=..., tile_n=...)   <- pass tile_n to geglu_apply
    """
    two_dim_out, dim_in = weight.shape
    dim_out = two_dim_out // 2

    dim_in_pad = _round_up(dim_in, 128)
    dim_out_128 = _round_up(dim_out, 128)
    # Guarantee >=2 N tiles whenever dim_out allows it, so a 'parallel' grid axis always
    # has work for both TensorCores on v7x (even for decode-shaped / small-M inputs).
    if dim_out_128 >= 256:
        tile_n = min(tile_n, dim_out_128 // 2)
    tile_n = _largest_divisor_tile(tile_n, dim_out_128, 128)
    dim_out_pad = dim_out_128
    n_tiles = dim_out_pad // tile_n

    wv = weight[:dim_out, :].T              # (dim_in, dim_out)  value half
    wg = weight[dim_out:, :].T              # (dim_in, dim_out)  gate half
    pad = ((0, dim_in_pad - dim_in), (0, dim_out_pad - dim_out))
    wv = jnp.pad(wv, pad).reshape(dim_in_pad, n_tiles, tile_n)
    wg = jnp.pad(wg, pad).reshape(dim_in_pad, n_tiles, tile_n)
    w_packed = jnp.concatenate([wv, wg], axis=-1).reshape(dim_in_pad, n_tiles * 2 * tile_n)

    bv = jnp.pad(bias[:dim_out], (0, dim_out_pad - dim_out)).reshape(n_tiles, tile_n)
    bg = jnp.pad(bias[dim_out:], (0, dim_out_pad - dim_out)).reshape(n_tiles, tile_n)
    b_packed = jnp.concatenate([bv, bg], axis=-1).reshape(1, n_tiles * 2 * tile_n)

    meta = dict(dim_in=dim_in, dim_out=dim_out, tile_n=tile_n)
    return w_packed, b_packed, meta


# --------------------------------------------------------------------------------------
# Forward
# --------------------------------------------------------------------------------------

@functools.partial(jax.jit,
                   static_argnames=("dim_out", "tile_n", "tile_m", "tile_k", "mode"))
def geglu_apply(x, w_packed, b_packed, *, dim_out, tile_n,
                tile_m=512, tile_k=1024, mode="auto"):
    """GEGLU forward on pre-packed params.  x: (..., dim_in) -> (..., dim_out).

    `tile_n` MUST be the value returned in meta by prepare_geglu_params (the packed
    [value|gate] interleave granularity).  tile_m / tile_k are hints, clipped to
    aligned, VMEM-fitting values.  mode in {"auto", "resident", "ktiled"}.
    """
    lead_shape = x.shape[:-1]
    dim_in = x.shape[-1]
    dim_in_pad, packed_cols = w_packed.shape
    assert packed_cols % (2 * tile_n) == 0, "tile_n must match prepare_geglu_params"
    dim_out_pad = packed_cols // 2
    n_tiles = dim_out_pad // tile_n
    assert dim_in <= dim_in_pad

    x2d = x.reshape(-1, dim_in)
    M = x2d.shape[0]

    # Zero-pad only the contraction (K) dim — required because W is K-padded with zeros.
    # The M axis is never padded: ragged last M tiles are handled by Pallas masking.
    if dim_in_pad != dim_in:
        x2d = jnp.pad(x2d, ((0, 0), (0, dim_in_pad - dim_in)))

    # Sublane-aligned M tile: bf16 packs 2 rows / sublane, int8/fp8 pack 4.
    m_align = {4: 8, 2: 16, 1: 32}.get(x.dtype.itemsize, 8)
    tile_m = max(m_align, min(tile_m, _round_up(M, m_align)))
    tile_m = _round_up(tile_m, m_align)
    m_tiles = _cdiv(M, tile_m)

    x_b = x2d.dtype.itemsize
    w_b = w_packed.dtype.itemsize
    b_b = b_packed.dtype.itemsize
    vmem_ceiling = _vmem_ceiling_bytes()

    # Footprint of the W-resident path (double-buffered x / W / b / out blocks).
    resident_fp = 2 * (tile_m * dim_in_pad * x_b
                       + dim_in_pad * 2 * tile_n * w_b
                       + 2 * tile_n * b_b
                       + tile_m * tile_n * x_b)
    use_resident = (mode == "resident") or (mode == "auto" and resident_fp <= vmem_ceiling)

    if use_resident:
        # ---------------- Path 1: W-resident, no K axis, no accumulator --------------
        # Grid is (j outer, i inner): the W/bias block index (0, j) is unchanged across
        # consecutive i steps, so Pallas keeps them resident and only streams x.
        grid = (n_tiles, m_tiles)
        cost = pl.CostEstimate(
            flops=2 * m_tiles * tile_m * dim_in_pad * 2 * dim_out_pad,
            transcendentals=m_tiles * tile_m * dim_out_pad,
            bytes_accessed=(m_tiles * tile_m * dim_in_pad * x_b * n_tiles  # x per N tile
                            + dim_in_pad * 2 * dim_out_pad * w_b          # W once
                            + m_tiles * tile_m * dim_out_pad * x_b),
        )
        out2d = pl.pallas_call(
            _geglu_kernel_resident,
            out_shape=jax.ShapeDtypeStruct((M, dim_out_pad), x.dtype),
            grid_spec=pltpu.PrefetchScalarGridSpec(
                num_scalar_prefetch=0,
                grid=grid,
                in_specs=[
                    pl.BlockSpec((tile_m, dim_in_pad), lambda j, i: (i, 0)),       # x
                    pl.BlockSpec((dim_in_pad, 2 * tile_n), lambda j, i: (0, j)),   # W (resident)
                    pl.BlockSpec((1, 2 * tile_n), lambda j, i: (0, j)),            # bias
                ],
                out_specs=pl.BlockSpec((tile_m, tile_n), lambda j, i: (i, j)),
            ),
            compiler_params=pltpu.CompilerParams(
                dimension_semantics=("parallel", "parallel"),
                vmem_limit_bytes=int(min(max(2 * resident_fp, 16 << 20), vmem_ceiling)),
            ),
            cost_estimate=cost,
        )(x2d, w_packed, b_packed)

    else:
        # ---------------- Path 2: K-tiled with an f32 VMEM accumulator ---------------
        tile_k = _largest_divisor_tile(tile_k, dim_in_pad, 128)

        def _fp(tm, tk):
            return (2 * (tm * tk * x_b + tk * 2 * tile_n * w_b
                         + 2 * tile_n * b_b + tm * tile_n * x_b)
                    + tm * 2 * tile_n * 4)

        # Shrink tiles if a user-supplied configuration would blow the VMEM budget.
        while _fp(tile_m, tile_k) > vmem_ceiling and tile_k > 128:
            new_tk = _largest_divisor_tile(max(128, tile_k // 2), dim_in_pad, 128)
            if new_tk == tile_k:
                break
            tile_k = new_tk
        while _fp(tile_m, tile_k) > vmem_ceiling and tile_m > m_align:
            tile_m = max(m_align, _round_up(tile_m // 2, m_align))
        m_tiles = _cdiv(M, tile_m)
        k_tiles = dim_in_pad // tile_k
        ktiled_fp = _fp(tile_m, tile_k)

        grid = (m_tiles, n_tiles, k_tiles)
        cost = pl.CostEstimate(
            flops=2 * m_tiles * tile_m * dim_in_pad * 2 * dim_out_pad,
            transcendentals=m_tiles * tile_m * dim_out_pad,
            bytes_accessed=(m_tiles * tile_m * dim_in_pad * x_b * n_tiles
                            + dim_in_pad * 2 * dim_out_pad * w_b * m_tiles  # W re-streamed per M tile
                            + m_tiles * tile_m * dim_out_pad * x_b),
        )
        out2d = pl.pallas_call(
            _geglu_kernel_ktiled,
            out_shape=jax.ShapeDtypeStruct((M, dim_out_pad), x.dtype),
            grid_spec=pltpu.PrefetchScalarGridSpec(
                num_scalar_prefetch=0,
                grid=grid,
                in_specs=[
                    pl.BlockSpec((tile_m, tile_k), lambda i, j, k: (i, k)),        # x
                    # TODO(synk): sweep pipeline_mode=pl.Buffered(3) here if profiles show exposed W DMA.
                    pl.BlockSpec((tile_k, 2 * tile_n), lambda i, j, k: (k, j)),    # packed W
                    pl.BlockSpec((1, 2 * tile_n), lambda i, j, k: (0, j)),         # packed bias
                ],
                out_specs=pl.BlockSpec((tile_m, tile_n), lambda i, j, k: (i, j)),
                scratch_shapes=[pltpu.VMEM((tile_m, 2 * tile_n), jnp.float32)],
            ),
            compiler_params=pltpu.CompilerParams(
                dimension_semantics=("parallel", "parallel", "arbitrary"),
                vmem_limit_bytes=int(min(max(2 * ktiled_fp, 16 << 20), vmem_ceiling)),
            ),
            cost_estimate=cost,
        )(x2d, w_packed, b_packed)

    return out2d[:, :dim_out].reshape(*lead_shape, dim_out)


def geglu(x, weight, bias, *, tile_m=512, tile_k=1024, mode="auto"):
    """Convenience wrapper: PyTorch-layout params in, GEGLU out.
    (For real use, call prepare_geglu_params once at init and reuse the packed params.)"""
    w_packed, b_packed, meta = prepare_geglu_params(weight, bias)
    return geglu_apply(x, w_packed, b_packed, dim_out=meta["dim_out"], tile_n=meta["tile_n"],
                       tile_m=tile_m, tile_k=tile_k, mode=mode)


# --------------------------------------------------------------------------------------
# Self-test
# --------------------------------------------------------------------------------------

def _reference(x, weight, bias, dim_out):
    proj = x @ weight.T + bias
    v, g = proj[..., :dim_out], proj[..., dim_out:]
    return v * (0.5 * g * (1.0 + lax.erf(g / jnp.sqrt(2.0))))


if __name__ == "__main__":
    key = jax.random.PRNGKey(0)

    # ---- Case 1: small shapes consistent with the module forward (B, seq, dim_in) ----
    B, N, dim_in, dim_out = 2, 8, 32, 32
    k1, k2, k3, key = jax.random.split(key, 4)
    x = jax.random.normal(k1, (B, N, dim_in), dtype=jnp.float32)
    bound = 1.0 / math.sqrt(dim_in)
    weight = jax.random.uniform(k2, (2 * dim_out, dim_in),
                                minval=-bound, maxval=bound, dtype=jnp.float32)
    bias = jax.random.uniform(k3, (2 * dim_out,),
                              minval=-bound, maxval=bound, dtype=jnp.float32)

    # One-time param packing (module init), then the hot-path apply (auto -> resident).
    w_packed, b_packed, meta = prepare_geglu_params(weight, bias)
    out = geglu_apply(x, w_packed, b_packed, dim_out=meta["dim_out"], tile_n=meta["tile_n"])
    out = jax.block_until_ready(out)
    ref = _reference(x, weight, bias, dim_out)
    assert out.shape == (B, N, dim_out)
    assert jnp.allclose(out, ref, atol=2e-5, rtol=2e-5)

    # ---- Case 2: ragged rows, K padding, multi-tile N — exercise BOTH paths ----
    B2, N2, din2, dout2 = 2, 19, 160, 320
    k1, k2, k3, key = jax.random.split(key, 4)
    x2 = jax.random.normal(k1, (B2, N2, din2), dtype=jnp.float32)
    bound2 = 1.0 / math.sqrt(din2)
    w2 = jax.random.uniform(k2, (2 * dout2, din2),
                            minval=-bound2, maxval=bound2, dtype=jnp.float32)
    b2 = jax.random.uniform(k3, (2 * dout2,),
                            minval=-bound2, maxval=bound2, dtype=jnp.float32)
    ref2 = _reference(x2, w2, b2, dout2)

    wp2, bp2, meta2 = prepare_geglu_params(w2, b2)
    out2a = geglu_apply(x2, wp2, bp2, dim_out=meta2["dim_out"], tile_n=meta2["tile_n"],
                        mode="resident")
    out2b = geglu_apply(x2, wp2, bp2, dim_out=meta2["dim_out"], tile_n=meta2["tile_n"],
                        tile_m=16, tile_k=128, mode="ktiled")   # grid (3, 3, 2) w/ accumulator
    jax.block_until_ready((out2a, out2b))
    assert out2a.shape == (B2, N2, dout2) and out2b.shape == (B2, N2, dout2)
    assert jnp.allclose(out2a, ref2, atol=2e-5, rtol=2e-5)
    assert jnp.allclose(out2b, ref2, atol=2e-5, rtol=2e-5)

    print("KERNEL_OK")
</pallas_src>

<mosaic_0001>
module attributes {stable_mosaic.version = 11 : i64} {
  func.func @_geglu_kernel_resident(%arg0: i32, %arg1: i32, %arg2: memref<16x128xf32, #tpu.memory_space<vmem>>, %arg3: memref<128x256xf32, #tpu.memory_space<vmem>>, %arg4: memref<1x256xf32, #tpu.memory_space<vmem>>, %arg5: memref<16x128xf32, #tpu.memory_space<vmem>>) attributes {dimension_semantics = [#tpu.dimension_semantics<parallel>, #tpu.dimension_semantics<parallel>], iteration_bounds = array<i64: 1, 1>, scalar_prefetch = 0 : i64, scratch_operands = 0 : i64, tpu.core_type = #tpu.core_type<tc>, window_params = [{transform_indices = @transform_0, window_bounds = array<i64: 16, 128>}, {transform_indices = @transform_1, window_bounds = array<i64: 128, 256>}, {transform_indices = @transform_2, window_bounds = array<i64: 1, 256>}, {transform_indices = @transform_3, window_bounds = array<i64: 16, 128>}]} {
    %c0 = arith.constant 0 : index
    %c0_0 = arith.constant 0 : index
    %0 = vector.load %arg2[%c0, %c0_0] : memref<16x128xf32, #tpu.memory_space<vmem>>, vector<16x128xf32>
    %c0_1 = arith.constant 0 : index
    %c0_2 = arith.constant 0 : index
    %1 = vector.load %arg3[%c0_1, %c0_2] : memref<128x256xf32, #tpu.memory_space<vmem>>, vector<128x256xf32>
    %cst = arith.constant dense<0.000000e+00> : vector<16x256xf32>
    %2 = tpu.matmul %0, %1, %cst {dimension_numbers = #tpu.dot_dimension_numbers<[1], [0], [0], [1], [0, 0, 1, 1], [], []>} : vector<16x128xf32>, vector<128x256xf32>, vector<16x256xf32> -> vector<16x256xf32>
    %c0_3 = arith.constant 0 : index
    %c0_4 = arith.constant 0 : index
    %3 = vector.load %arg4[%c0_3, %c0_4] : memref<1x256xf32, #tpu.memory_space<vmem>>, vector<1x256xf32>
    %4 = vector.broadcast %3 : vector<1x256xf32> to vector<16x256xf32>
    %5 = arith.addf %2, %4 : vector<16x256xf32>
    %6 = vector.extract_strided_slice %5 {offsets = [0, 0], sizes = [16, 128], strides = [1, 1]} : vector<16x256xf32> to vector<16x128xf32>
    %7 = vector.extract_strided_slice %5 {offsets = [0, 128], sizes = [16, 128], strides = [1, 1]} : vector<16x256xf32> to vector<16x128xf32>
    %cst_5 = arith.constant 5.000000e-01 : f32
    %8 = vector.broadcast %cst_5 : f32 to vector<16x128xf32>
    %9 = arith.mulf %8, %7 : vector<16x128xf32>
    %cst_6 = arith.constant 0.707106769 : f32
    %10 = vector.broadcast %cst_6 : f32 to vector<16x128xf32>
    %11 = arith.mulf %7, %10 : vector<16x128xf32>
    %12 = math.erf %11 : vector<16x128xf32>
    %cst_7 = arith.constant 1.000000e+00 : f32
    %13 = vector.broadcast %cst_7 : f32 to vector<16x128xf32>
    %14 = arith.addf %13, %12 : vector<16x128xf32>
    %15 = arith.mulf %9, %14 : vector<16x128xf32>
    %16 = arith.mulf %6, %15 : vector<16x128xf32>
    %c0_8 = arith.constant 0 : index
    %c0_9 = arith.constant 0 : index
    %17 = vector.load %arg5[%c0_8, %c0_9] : memref<16x128xf32, #tpu.memory_space<vmem>>, vector<16x128xf32>
    tpu.vector_store %arg5[%c0_8, %c0_9], %16 {strides = array<i32>} : memref<16x128xf32, #tpu.memory_space<vmem>>, vector<16x128xf32>,
    return
  }
  func.func @transform_0(%arg0: i32, %arg1: i32) -> (i32, i32) {
    %c0_i32 = arith.constant 0 : i32
    %c0_i32_0 = arith.constant 0 : i32
    return %arg1, %c0_i32 : i32, i32
  }
  func.func @transform_1(%arg0: i32, %arg1: i32) -> (i32, i32) {
    %c0_i32 = arith.constant 0 : i32
    %c0_i32_0 = arith.constant 0 : i32
    return %c0_i32, %arg0 : i32, i32
  }
  func.func @transform_2(%arg0: i32, %arg1: i32) -> (i32, i32) {
    %c0_i32 = arith.constant 0 : i32
    %c0_i32_0 = arith.constant 0 : i32
    return %c0_i32, %arg0 : i32, i32
  }
  func.func @transform_3(%arg0: i32, %arg1: i32) -> (i32, i32) {
    %c0_i32 = arith.constant 0 : i32
    return %arg1, %arg0 : i32, i32
  }
}

</mosaic_0001>

<bundles_post_ra>
// kernel: geglu_apply.1
= control target key start
LH: loop header
LB: loop body
LE: loop exit
PB: predicated region body
PF: predicated region fallthrough
CT: control target
= control target key end

     0   :  { %8 = vsyncpa [#allocation3], 0  ;;  %s232_s12 = smov [#allocation2]   ;;  %s274_s0 = inlined_call_operand.vmem [shape: f32[16,128], index: 0, kind: input, shape index: {}]   ;;  %s275_s1 = inlined_call_operand.hbm [shape: f32[128,256], index: 1, kind: input, shape index: {}]   ;;  %s276_s2 = inlined_call_operand.vmem [shape: f32[1,256], index: 2, kind: input, shape index: {}]   ;;  %s277_s3 = inlined_call_operand.vmem [shape: f32[16,128], index: 3, kind: output, shape index: {}]  }
   0x1   :  { %s16_s13 = sshll.u32 %s232_s12, 4  ;;  %s17_s13 = int_to_ptr.vmem [resolvable:$true] %s16_s13 }
   0x2   :  { %s218_s14 = scalar_lea.vmem %s17_s13, 4096  ;;  %p223_p1 = scmp.lt.s32.totalorder %s17_s13, %s17_s13 }
   0x3   :  { %p219_p0 = scmp.ne.s32.totalorder %s17_s13, %s218_s14  ;;  %p224_p2 = scmp.lt.s32.totalorder %s218_s14, %s218_s14 }
   0x5   :  { %p225_p3 = por %p224_p2, %p223_p1 }
   0x7   :  { %p226_p4 = pnand %p225_p3, %p219_p0 }
   0x9   :  { %229 = shalt.err (!%p226_p4)
}
   0xa   :  { %s233_s15 = smov 256   ;;  %s234_s16 = smov 16  }
   0xb   :  { %22 = dma.hbm_to_vmem [thread:$0]  %s275_s1, 4096, %s17_s13, [#allocation3], %s233_s15, %s233_s15, %s234_s16  }
   0xc   :  { %230 = dma.done.wait [#allocation3], 4096  }
   0xd   :  { %231 = vsyncadd [#allocation3], 4294963200  ;;  %v235_v0 = vmov 0.0   ;;  %v61_v1 = vld [vmem:[#allocation2 + $0xf8] sm:$0xff]  ;;  %v60_v2 = vld [vmem:[#allocation2 + $0xf0] sm:$0xff]  ;;  %v64_v35 = vlaneseq }
   0xe   :  { %138 = vmatprep.mubr.f32.mxu0 %v235_v0  ;;  %144 = vmatprep.mubr.f32.mxu1 %v235_v0  ;;  %v59_v3 = vld [vmem:[#allocation2 + $0xe8] sm:$0xff]  ;;  %v58_v4 = vld [vmem:[#allocation2 + $0xe0] sm:$0xff]  ;;  %v57_v5 = vld [vmem:[#allocation2 + $0xd8] sm:$0xff] }
   0xf   :  { %74 = vmatprep.subr.mxu0 %v61_v1  ;;  %170 = vmatprep.subr.mxu1 %v61_v1  ;;  %v56_v6 = vld [vmem:[#allocation2 + $0xd0] sm:$0xff]  ;;  %v55_v7 = vld [vmem:[#allocation2 + $0xc8] sm:$0xff]  ;;  %v54_v8 = vld [vmem:[#allocation2 + $0xc0] sm:$0xff]  ;;  %v65_v36 = vshrl.u32 %v64_v35, 7 }
  0x10   :  { %75 = vmatpush1.msra.mxu0 %v60_v2  ;;  %186 = vmatpush1.msra.mxu1 %v60_v2  ;;  %v53_v9 = vld [vmem:[#allocation2 + $0xb8] sm:$0xff]  ;;  %v52_v10 = vld [vmem:[#allocation2 + $0xb0] sm:$0xff]  ;;  %v51_v11 = vld [vmem:[#allocation2 + $0xa8] sm:$0xff] }
  0x11   :  { %76 = vmatprep.subr.mxu0 %v59_v3  ;;  %171 = vmatprep.subr.mxu1 %v59_v3  ;;  %v50_v12 = vld [vmem:[#allocation2 + $0xa0] sm:$0xff]  ;;  %v49_v13 = vld [vmem:[#allocation2 + $0x98] sm:$0xff]  ;;  %v48_v14 = vld [vmem:[#allocation2 + $0x90] sm:$0xff]  ;;  %v70_v37 = vsub.s32 1, %v65_v36  ;;  %v66_v48 = vsub.s32 0, %v65_v36 }
  0x12   :  { %77 = vmatpush1.msra.mxu0 %v58_v4  ;;  %187 = vmatpush1.msra.mxu1 %v58_v4  ;;  %v47_v15 = vld [vmem:[#allocation2 + $0x88] sm:$0xff]  ;;  %v46_v16 = vld [vmem:[#allocation2 + $0x80] sm:$0xff]  ;;  %v45_v17 = vld [vmem:[#allocation2 + $0x78] sm:$0xff] }
  0x13   :  { %78 = vmatprep.subr.mxu0 %v57_v5  ;;  %172 = vmatprep.subr.mxu1 %v57_v5  ;;  %v44_v18 = vld [vmem:[#allocation2 + $0x70] sm:$0xff]  ;;  %v43_v19 = vld [vmem:[#allocation2 + $0x68] sm:$0xff]  ;;  %v42_v20 = vld [vmem:[#allocation2 + $0x60] sm:$0xff] }
  0x14   :  { %79 = vmatpush1.msra.mxu0 %v56_v6  ;;  %188 = vmatpush1.msra.mxu1 %v56_v6  ;;  %v41_v21 = vld [vmem:[#allocation2 + $0x58] sm:$0xff]  ;;  %v40_v22 = vld [vmem:[#allocation2 + $0x50] sm:$0xff]  ;;  %v39_v23 = vld [vmem:[#allocation2 + $0x48] sm:$0xff] }
  0x15   :  { %80 = vmatprep.subr.mxu0 %v55_v7  ;;  %173 = vmatprep.subr.mxu1 %v55_v7  ;;  %v38_v24 = vld [vmem:[#allocation2 + $0x40] sm:$0xff]  ;;  %v37_v25 = vld [vmem:[#allocation2 + $0x38] sm:$0xff]  ;;  %v36_v26 = vld [vmem:[#allocation2 + $0x30] sm:$0xff] }
  0x16   :  { %81 = vmatpush1.msra.mxu0 %v54_v8  ;;  %189 = vmatpush1.msra.mxu1 %v54_v8  ;;  %v35_v27 = vld [vmem:[#allocation2 + $0x28] sm:$0xff]  ;;  %v34_v28 = vld [vmem:[#allocation2 + $0x20] sm:$0xff]  ;;  %v33_v29 = vld [vmem:[#allocation2 + $0x18] sm:$0xff] }
  0x17   :  { %82 = vmatprep.subr.mxu0 %v53_v9  ;;  %174 = vmatprep.subr.mxu1 %v53_v9  ;;  %v32_v30 = vld [vmem:[#allocation2 + $0x10] sm:$0xff]  ;;  %v31_v31 = vld [vmem:[#allocation2 + $0x8] sm:$0xff]  ;;  %v30_v32 = vld [vmem:[#allocation2] sm:$0xff] }
  0x18   :  { %83 = vmatpush1.msra.mxu0 %v52_v10  ;;  %190 = vmatpush1.msra.mxu1 %v52_v10  ;;  %v28_v33 = vld [vmem:[%s274_s0] sm:$0xff]  ;;  %v29_v34 = vld [vmem:[%s274_s0 + $0x8] sm:$0xff] }
  0x19   :  { %84 = vmatprep.subr.mxu0 %v51_v11  ;;  %175 = vmatprep.subr.mxu1 %v51_v11  ;;  %v62_v38 = vld [vmem:[%s276_s2] sm:$0x3] }
  0x1a   :  { %85 = vmatpush1.msra.mxu0 %v50_v12  ;;  %191 = vmatpush1.msra.mxu1 %v50_v12  ;;  %v71_v39 = vrot.slane %v62_v38, %v70_v37  ;;  %v67_v49 = vrot.slane %v62_v38, %v66_v48 }
  0x1b   :  { %86 = vmatprep.subr.mxu0 %v49_v13  ;;  %176 = vmatprep.subr.mxu1 %v49_v13 }
  0x1c   :  { %87 = vmatpush1.msra.mxu0 %v48_v14  ;;  %192 = vmatpush1.msra.mxu1 %v48_v14 }
  0x1d   :  { %88 = vmatprep.subr.mxu0 %v47_v15  ;;  %177 = vmatprep.subr.mxu1 %v47_v15 }
  0x1e   :  { %89 = vmatpush1.msra.mxu0 %v46_v16  ;;  %193 = vmatpush1.msra.mxu1 %v46_v16 }
  0x1f   :  { %90 = vmatprep.subr.mxu0 %v45_v17  ;;  %178 = vmatprep.subr.mxu1 %v45_v17 }
  0x20   :  { %91 = vmatpush1.msra.mxu0 %v44_v18  ;;  %194 = vmatpush1.msra.mxu1 %v44_v18 }
  0x21   :  { %92 = vmatprep.subr.mxu0 %v43_v19  ;;  %179 = vmatprep.subr.mxu1 %v43_v19 }
  0x22   :  { %93 = vmatpush1.msra.mxu0 %v42_v20  ;;  %195 = vmatpush1.msra.mxu1 %v42_v20 }
  0x23   :  { %94 = vmatprep.subr.mxu0 %v41_v21  ;;  %180 = vmatprep.subr.mxu1 %v41_v21 }
  0x24   :  { %95 = vmatpush1.msra.mxu0 %v40_v22  ;;  %196 = vmatpush1.msra.mxu1 %v40_v22 }
  0x25   :  { %96 = vmatprep.subr.mxu0 %v39_v23  ;;  %181 = vmatprep.subr.mxu1 %v39_v23 }
  0x26   :  { %97 = vmatpush1.msra.mxu0 %v38_v24  ;;  %197 = vmatpush1.msra.mxu1 %v38_v24 }
  0x27   :  { %98 = vmatprep.subr.mxu0 %v37_v25  ;;  %182 = vmatprep.subr.mxu1 %v37_v25 }
  0x28   :  { %99 = vmatpush1.msra.mxu0 %v36_v26  ;;  %198 = vmatpush1.msra.mxu1 %v36_v26 }
  0x29   :  { %100 = vmatprep.subr.mxu0 %v35_v27  ;;  %183 = vmatprep.subr.mxu1 %v35_v27 }
  0x2a   :  { %101 = vmatpush1.msra.mxu0 %v34_v28  ;;  %199 = vmatpush1.msra.mxu1 %v34_v28 }
  0x2b   :  { %102 = vmatprep.subr.mxu0 %v33_v29  ;;  %184 = vmatprep.subr.mxu1 %v33_v29 }
  0x2c   :  { %103 = vmatpush1.msra.mxu0 %v32_v30  ;;  %200 = vmatpush1.msra.mxu1 %v32_v30 }
  0x2d   :  { %104 = vmatprep.subr.mxu0 %v31_v31  ;;  %185 = vmatprep.subr.mxu1 %v31_v31 }
  0x2e   :  { %105 = vmatpush1.msra.mxu0 %v30_v32  ;;  %201 = vmatpush1.msra.mxu1 %v30_v32 }
  0x2f   :  { %139 = vmatmul.mubr.f32.vlgmr.msra.gmra.mxu0 %v28_v33  ;;  %145 = vmatmul.mubr.f32.vlgmr.msra.gmra.mxu1 %v29_v34 }
  0xef   :  { %v140_v40 = vpop.f32.mrf.mxu0  ;;  %v146_v41 = vpop.f32.mrf.mxu1 }
  0xf0   :  { %v141_v56 = vadd.f32 %v140_v40, %v67_v49  ;;  %v147_v58 = vadd.f32 %v146_v41, %v67_v49 }
  0xf1   :  { %v142_v42 = vpop.f32.mrf.mxu0  ;;  %v148_v43 = vpop.f32.mrf.mxu1 }
  0xf2   :  { %v143_v44 = vadd.f32 %v142_v42, %v71_v39  ;;  %v149_v45 = vadd.f32 %v148_v43, %v71_v39 }
  0xf4   :  { %v153_v46 = vmul.f32 0.70710677, %v143_v44  ;;  %v154_v47 = vmul.f32 0.70710677, %v149_v45  ;;  %v151_v52 = vmul.f32 0.5, %v143_v44  ;;  %v152_v54 = vmul.f32 0.5, %v149_v45 }
  0xf6   :  { %206 = verf.f32 %v153_v46 }
  0xf7   :  { %208 = verf.f32 %v154_v47 }
 0x103   :  { %v207_v50 = vpop.eup %206 }
 0x104   :  { %v209_v51 = vpop.eup %208  ;;  %v157_v53 = vadd.f32 1.0, %v207_v50 }
 0x105   :  { %v158_v55 = vadd.f32 1.0, %v209_v51 }
 0x106   :  { %v159_v57 = vmul.f32 %v157_v53, %v151_v52 }
 0x107   :  { %v160_v59 = vmul.f32 %v158_v55, %v152_v54 }
 0x108   :  { %v161_v60 = vmul.f32 %v159_v57, %v141_v56 }
 0x109   :  { %v162_v61 = vmul.f32 %v160_v59, %v147_v58 }
 0x10a   :  { %163 = vst [vmem:[%s277_s3] sm:$0xff] %v161_v60 }
 0x10b   :  { %164 = vst [vmem:[%s277_s3 + $0x8] sm:$0xff] %v162_v61 }
 0x10c   :  { %169 = vsyncpa [#allocation3], 1 }

</bundles_post_ra>
